<compile_context>
chip_gen: v7x
topology: tpu7x:2x2x1
jax: 0.10.0
libtpu: 0.0.40
codegen_flags: <defaults>
</compile_context>

<pallas_src>
import jax
import jax.numpy as jnp
from jax.experimental import pallas as pl
from jax.experimental.pallas import tpu as pltpu

_LANE = 1024                       # lane-dense width for the flattened path (multiple of 128)
_TARGET_BLOCK_BYTES = 4 << 20      # ~4 MiB per block (measured ~86% of HBM roofline)
_SMALL_INPUT_ELEMS = 1024          # below this, pallas_call overhead dominates -> XLA fallback


def _swish_kernel(x_ref, o_ref):
    x = x_ref[...].astype(jnp.float32)
    # swish(x) = x * sigmoid(x) = 0.5 * x * (1 + tanh(x/2))
    # Single transcendental (EUP slot) per vreg; the extra mul/add ride the 4-wide VALU.
    o_ref[...] = (0.5 * x * (1.0 + jnp.tanh(0.5 * x))).astype(o_ref.dtype)


def _choose_tile_r(rows: int, cols: int, itemsize: int) -> int:
    """Pick a row-tile: multiple of 8 (or full dim), ~4 MiB block, >=4 grid steps when possible."""
    if rows <= 8:
        return rows  # full-dim block (exempt from the 8-divisibility rule)
    cap = max(8, (_TARGET_BLOCK_BYTES // (cols * itemsize)) // 8 * 8)
    quarter = ((-(-rows // 4)) + 7) // 8 * 8  # ceil(rows/4) rounded up to a multiple of 8
    return max(8, min(cap, quarter))


def _swish_2d(x2d: jax.Array) -> jax.Array:
    rows, cols = x2d.shape
    tile_r = _choose_tile_r(rows, cols, jnp.dtype(x2d.dtype).itemsize)
    grid = (pl.cdiv(rows, tile_r),)
    return pl.pallas_call(
        _swish_kernel,
        out_shape=jax.ShapeDtypeStruct((rows, cols), x2d.dtype),
        grid_spec=pl.GridSpec(
            grid=grid,
            in_specs=[pl.BlockSpec((tile_r, cols), lambda i: (i, 0))],
            out_specs=pl.BlockSpec((tile_r, cols), lambda i: (i, 0)),
        ),
        compiler_params=pltpu.CompilerParams(
            dimension_semantics=("parallel",),
            vmem_limit_bytes=32 << 20,
        ),
    )(x2d)


def _lambda_swish_impl(x: jax.Array) -> jax.Array:
    """Lambda(lambda x: x * sigmoid(x)) applied elementwise via a Pallas TPU kernel."""
    total = x.size
    if total == 0:
        return x
    if total < _SMALL_INPUT_ELEMS:
        # Kernel-launch + pipeline setup dominates at this size; let XLA fuse it.
        return (x * jax.nn.sigmoid(x)).astype(x.dtype)

    itemsize = jnp.dtype(x.dtype).itemsize

    # Path A: trailing dim already lane-dense -> collapse leading dims (free reshape).
    if x.ndim >= 2:
        cols = x.shape[-1]
        if cols % 128 == 0 and 8 * cols * itemsize <= _TARGET_BLOCK_BYTES:
            rows = total // cols
            return _swish_2d(x.reshape(rows, cols)).reshape(x.shape)

    flat = x.reshape(total)

    # Path B: size divides the lane-dense slab width -> free reshape, no padding.
    if total % _LANE == 0:
        rows = total // _LANE
        return _swish_2d(flat.reshape(rows, _LANE)).reshape(x.shape)

    # Path C (ragged): pad to a lane-dense slab. Only this path pays the extra HBM pass.
    # TODO(synk): replace with a 1-D BlockSpec with a masked ragged last block to drop the pad/slice.
    pad = (-total) % _LANE
    padded = jnp.pad(flat, (0, pad))
    rows = (total + pad) // _LANE
    out = _swish_2d(padded.reshape(rows, _LANE))
    return out.reshape(rows * _LANE)[:total].reshape(x.shape)


lambda_swish = jax.jit(_lambda_swish_impl)


if __name__ == "__main__":
    key = jax.random.PRNGKey(0)
    # Small NCHW input consistent with typical use of the Lambda nonlinearity.
    x = jax.random.normal(key, (2, 4, 16, 16), dtype=jnp.float32)

    y = lambda_swish(x)
    y = jax.block_until_ready(y)

    # Reference check in plain JAX (exact swish formulation -> tight tolerance).
    ref = x * jax.nn.sigmoid(x)
    assert y.shape == x.shape and y.dtype == x.dtype
    assert jnp.max(jnp.abs(y - ref)) < 1e-5

    print("KERNEL_OK")
</pallas_src>

<mosaic_0001>
module attributes {stable_mosaic.version = 11 : i64} {
  func.func @_swish_kernel(%arg0: i32, %arg1: memref<2x1024xf32, #tpu.memory_space<vmem>>, %arg2: memref<2x1024xf32, #tpu.memory_space<vmem>>) attributes {dimension_semantics = [#tpu.dimension_semantics<parallel>], iteration_bounds = array<i64: 1>, scalar_prefetch = 0 : i64, scratch_operands = 0 : i64, tpu.core_type = #tpu.core_type<tc>, window_params = [{transform_indices = @transform_0, window_bounds = array<i64: 2, 1024>}, {transform_indices = @transform_1, window_bounds = array<i64: 2, 1024>}]} {
    %c0 = arith.constant 0 : index
    %c0_0 = arith.constant 0 : index
    %0 = vector.load %arg1[%c0, %c0_0] : memref<2x1024xf32, #tpu.memory_space<vmem>>, vector<2x1024xf32>
    %cst = arith.constant 5.000000e-01 : f32
    %1 = vector.broadcast %cst : f32 to vector<2x1024xf32>
    %2 = arith.mulf %1, %0 : vector<2x1024xf32>
    %cst_1 = arith.constant 5.000000e-01 : f32
    %3 = vector.broadcast %cst_1 : f32 to vector<2x1024xf32>
    %4 = arith.mulf %3, %0 : vector<2x1024xf32>
    %5 = math.tanh %4 : vector<2x1024xf32>
    %cst_2 = arith.constant 1.000000e+00 : f32
    %6 = vector.broadcast %cst_2 : f32 to vector<2x1024xf32>
    %7 = arith.addf %6, %5 : vector<2x1024xf32>
    %8 = arith.mulf %2, %7 : vector<2x1024xf32>
    %c0_3 = arith.constant 0 : index
    %c0_4 = arith.constant 0 : index
    %9 = vector.load %arg2[%c0_3, %c0_4] : memref<2x1024xf32, #tpu.memory_space<vmem>>, vector<2x1024xf32>
    tpu.vector_store %arg2[%c0_3, %c0_4], %8 {strides = array<i32>} : memref<2x1024xf32, #tpu.memory_space<vmem>>, vector<2x1024xf32>,
    return
  }
  func.func @transform_0(%arg0: i32) -> (i32, i32) {
    %c0_i32 = arith.constant 0 : i32
    %c0_i32_0 = arith.constant 0 : i32
    return %arg0, %c0_i32 : i32, i32
  }
  func.func @transform_1(%arg0: i32) -> (i32, i32) {
    %c0_i32 = arith.constant 0 : i32
    %c0_i32_0 = arith.constant 0 : i32
    return %arg0, %c0_i32 : i32, i32
  }
}

</mosaic_0001>

<bundles_post_ra>
// kernel: _lambda_swish_impl.1
= control target key start
LH: loop header
LB: loop body
LE: loop exit
PB: predicated region body
PF: predicated region fallthrough
CT: control target
= control target key end

     0   :  { %s50_s0 = inlined_call_operand.vmem [shape: f32[2,1024], index: 0, kind: input, shape index: {}]   ;;  %s51_s1 = inlined_call_operand.vmem [shape: f32[2,1024], index: 1, kind: output, shape index: {}]  }
   0x1   :  { %v8_v0 = vld [vmem:[%s50_s0] sm:$0xff]  ;;  %v9_v1 = vld [vmem:[%s50_s0 + $0x8] sm:$0xff] }
   0x2   :  { %v10_v2 = vmul.f32 0.5, %v8_v0  ;;  %v11_v3 = vmul.f32 0.5, %v9_v1 }
   0x4   :  { %24 = vtanh.f32 %v10_v2 }
   0x5   :  { %26 = vtanh.f32 %v11_v3 }
   0xe   :  { %v25_v4 = vpop.eup %24 }
   0xf   :  { %v27_v5 = vpop.eup %26  ;;  %v14_v6 = vadd.f32 1.0, %v25_v4 }
  0x10   :  { %v15_v7 = vadd.f32 1.0, %v27_v5 }
  0x11   :  { %v16_v8 = vmul.f32 %v14_v6, %v10_v2 }
  0x12   :  { %v17_v9 = vmul.f32 %v15_v7, %v11_v3 }
  0x13   :  { %18 = vst [vmem:[%s51_s1] sm:$0xff] %v16_v8 }
  0x14   :  { %19 = vst [vmem:[%s51_s1 + $0x8] sm:$0xff] %v17_v9 }

</bundles_post_ra>
